<compile_context>
chip_gen: v7x
topology: tpu7x:2x2x1
jax: 0.10.0
libtpu: 0.0.40
codegen_flags: <defaults>
</compile_context>

<pallas_src>
import jax
import jax.numpy as jnp
from jax.experimental import pallas as pl
from jax.experimental.pallas import tpu as pltpu


def _round_up(a, b):
    return (a + b - 1) // b * b


def _make_mlp_kernel(num_linear_layers, last_layer_on_vpu):
    """Fused MLP kernel for `num_linear_layers` Linear layers.

    Kernel signature: kernel(x_ref, w0, b0, w1, b1, ..., o_ref)
    All but the last Linear are followed by LeakyReLU(0.2) (+ identity Dropout);
    the last Linear is followed by Sigmoid.
    """

    def kernel(x_ref, *refs):
        o_ref = refs[-1]
        param_refs = refs[:-1]
        assert len(param_refs) == 2 * num_linear_layers

        h = x_ref[...]  # [tile, in] in the compute dtype (bf16 by default)
        for i in range(num_linear_layers):
            w = param_refs[2 * i][...]
            b = param_refs[2 * i + 1][...]
            is_last = i == num_linear_layers - 1

            if is_last and last_layer_on_vpu:
                # Final out_dim == 1: VPU multiply + XLU lane-reduce instead of an
                # N=1 MXU matmul. w was pre-transposed to [1, prev] in the wrapper
                # so the broadcast multiply is lane-aligned; reduce in f32.
                h = jnp.sum(h.astype(jnp.float32) * w.astype(jnp.float32),
                            axis=-1, keepdims=True)
                h = h + b.astype(jnp.float32)
            else:
                # Cast h back to the weight dtype so EVERY layer's matmul runs on
                # the native bf16 MXU path (after layer 1, h is f32 from the
                # accumulation). f32 accumulation via preferred_element_type.
                h = jnp.dot(h.astype(w.dtype), w,
                            preferred_element_type=jnp.float32)
                h = h + b.astype(jnp.float32)
                if not is_last:
                    # LeakyReLU(0.2): slope < 1, so max(h, 0.2h) == leaky_relu(h).
                    h = jnp.maximum(h, 0.2 * h)
                    # Dropout(0.5): identity in eval mode.

        # Sigmoid: exp -> EUP, approximate reciprocal -> EUP (VALU stays free).
        o_ref[...] = pl.reciprocal(1.0 + jnp.exp(-h), approx=True).astype(o_ref.dtype)

    return kernel


def _choose_batch_tile(B, batch_tile, min_grid_steps):
    """Rows per grid step: multiple of 8, preferably dividing B (no jnp.pad),
    and capped so the grid has >= min_grid_steps steps when B allows (v7x)."""
    cap = max(8, _round_up(pl.cdiv(B, max(1, min_grid_steps)), 8))
    desired = max(8, min(_round_up(batch_tile, 8), cap, _round_up(B, 8)))
    if B % 8 == 0:
        bt = desired
        while bt >= 8:
            if B % bt == 0:          # exact divisor -> no padding / extra HBM copy
                return bt
            bt -= 8
    return desired


def discriminator_forward(x, params, *, batch_tile=2048, min_grid_steps=2,
                          compute_dtype=jnp.bfloat16):
    """Runs the fused Discriminator MLP as a single Pallas TPU kernel.

    x:      [B, input_size]
    params: list of (W, b) with W: [in, out], b: [1, out]   (W transposed vs PyTorch)
    batch_tile:     upper bound on rows per grid step (amortizes per-step overhead).
    min_grid_steps: keep >= 2 so both v7x TensorCores get a tile (costs ~0.35 us
                    on single-TC v5e/v6e).
    compute_dtype:  bf16 (default) halves HBM traffic for x/weights and keeps all
                    matmuls on the native bf16 MXU path; pass jnp.float32 for full
                    precision, or None to use the dtypes as given.
    returns [B, 1] float32 sigmoid probabilities.
    """
    B, in_dim = x.shape
    num_linear = len(params)
    out_dim = params[-1][0].shape[1]  # = 1 for the Discriminator
    last_layer_on_vpu = out_dim == 1

    if compute_dtype is not None:
        # No-ops when x / params were already pre-cast once outside the call path.
        if x.dtype != compute_dtype:
            x = x.astype(compute_dtype)
        params = [(w if w.dtype == compute_dtype else w.astype(compute_dtype),
                   b if b.dtype == compute_dtype else b.astype(compute_dtype))
                  for (w, b) in params]

    bt = _choose_batch_tile(B, batch_tile, min_grid_steps)
    b_pad = _round_up(B, bt)
    if b_pad != B:
        # Ragged-tail fallback only (never taken when a divisor tile was found).
        x = jnp.pad(x, ((0, b_pad - B), (0, 0)))
    grid = (b_pad // bt,)

    kernel = _make_mlp_kernel(num_linear, last_layer_on_vpu)

    # x is tiled over the batch; weights/biases are broadcast (constant index_map
    # -> fetched once, resident in VMEM across all grid steps).
    in_specs = [pl.BlockSpec((bt, in_dim), lambda i: (i, 0))]
    flat_params = []
    for li, (w, b) in enumerate(params):
        # Last 1-wide layer is computed on the VPU; pass its weight lane-dense.
        w_pass = w.T if (last_layer_on_vpu and li == num_linear - 1) else w
        in_specs.append(pl.BlockSpec(w_pass.shape, lambda i: (0, 0)))
        in_specs.append(pl.BlockSpec(b.shape, lambda i: (0, 0)))
        flat_params.extend([w_pass, b])

    out_specs = pl.BlockSpec((bt, out_dim), lambda i: (i, 0))

    # Advisory cost estimate: this call is launch-latency dominated, so help the
    # XLA scheduler place it against surrounding ops.
    flops = int(2 * b_pad * sum(w.shape[0] * w.shape[1] for (w, _) in params))
    bytes_accessed = int(x.size * x.dtype.itemsize
                         + sum(p.size * p.dtype.itemsize for p in flat_params)
                         + b_pad * out_dim * 4)
    cost = pl.CostEstimate(flops=flops,
                           transcendentals=int(2 * b_pad * out_dim),
                           bytes_accessed=bytes_accessed)

    fn = pl.pallas_call(
        kernel,
        out_shape=jax.ShapeDtypeStruct((b_pad, out_dim), jnp.float32),
        grid_spec=pltpu.PrefetchScalarGridSpec(
            num_scalar_prefetch=0,
            grid=grid,
            in_specs=in_specs,
            out_specs=out_specs,
        ),
        compiler_params=pltpu.CompilerParams(
            dimension_semantics=("parallel",),
        ),
        cost_estimate=cost,
    )
    out = fn(x, *flat_params)
    return out[:B] if b_pad != B else out


def init_discriminator_params(key, input_size, hidden_sizes):
    """Deterministic init mimicking PyTorch nn.Linear (uniform +/- 1/sqrt(fan_in)).

    Returns list of (W [in,out], b [1,out]) in forward order, final out = 1.
    """
    sizes = [input_size] + list(hidden_sizes) + [1]
    params = []
    for i in range(len(sizes) - 1):
        fan_in, fan_out = sizes[i], sizes[i + 1]
        key, kw, kb = jax.random.split(key, 3)
        bound = 1.0 / jnp.sqrt(jnp.float32(fan_in))
        w = jax.random.uniform(kw, (fan_in, fan_out), jnp.float32, -bound, bound)
        b = jax.random.uniform(kb, (1, fan_out), jnp.float32, -bound, bound)
        params.append((w, b))
    return params


def discriminator_ref(x, params):
    """Pure-JAX f32 reference (eval-mode dropout)."""
    h = x
    for i, (w, b) in enumerate(params):
        h = h @ w + b
        if i < len(params) - 1:
            h = jnp.maximum(h, 0.2 * h)
    return jax.nn.sigmoid(h)


if __name__ == "__main__":
    key = jax.random.PRNGKey(0)

    # batch=512 with the tile-chooser -> bt=256, grid=(2,): both v7x TCs get a
    # tile, 256 rows fill the MXU on v6e/v7x (and are a multiple of 128 for v5e),
    # and 256 divides 512 so no jnp.pad copy of x is made.
    batch = 512
    input_size = 64
    hidden_sizes = [128, 64]

    kx, kp = jax.random.split(key)
    x = jax.random.normal(kx, (batch, input_size), jnp.float32)
    params = init_discriminator_params(kp, input_size, hidden_sizes)

    ref = discriminator_ref(x, params)

    # f32 path: tight check (only the EUP approximate-reciprocal error remains).
    out_f32 = jax.block_until_ready(
        discriminator_forward(x, params, compute_dtype=jnp.float32))
    assert out_f32.shape == (batch, 1)
    assert jnp.allclose(out_f32, ref, atol=2e-3, rtol=2e-3), "f32 mismatch vs reference"

    # Default bf16 path: params and x pre-cast ONCE outside the call path.
    params_bf16 = [(w.astype(jnp.bfloat16), b.astype(jnp.bfloat16)) for (w, b) in params]
    x_bf16 = x.astype(jnp.bfloat16)
    out_bf16 = jax.block_until_ready(discriminator_forward(x_bf16, params_bf16))
    assert out_bf16.shape == (batch, 1)
    # Tolerance covers bf16 rounding across 3 layers + approx reciprocal.
    assert jnp.allclose(out_bf16, ref, atol=3e-2, rtol=3e-2), "bf16 mismatch vs reference"

    print("KERNEL_OK")
</pallas_src>

<mosaic_0001>
module attributes {stable_mosaic.version = 11 : i64} {
  func.func @kernel(%arg0: i32, %arg1: memref<256x64xf32, #tpu.memory_space<vmem>>, %arg2: memref<64x128xf32, #tpu.memory_space<vmem>>, %arg3: memref<1x128xf32, #tpu.memory_space<vmem>>, %arg4: memref<128x64xf32, #tpu.memory_space<vmem>>, %arg5: memref<1x64xf32, #tpu.memory_space<vmem>>, %arg6: memref<1x64xf32, #tpu.memory_space<vmem>>, %arg7: memref<1x1xf32, #tpu.memory_space<vmem>>, %arg8: memref<256x1xf32, #tpu.memory_space<vmem>>) attributes {dimension_semantics = [#tpu.dimension_semantics<parallel>], iteration_bounds = array<i64: 2>, scalar_prefetch = 0 : i64, scratch_operands = 0 : i64, tpu.core_type = #tpu.core_type<tc>, window_params = [{transform_indices = @transform_0, window_bounds = array<i64: 256, 64>}, {pipeline_mode = #tpu.pipeline_mode<synchronous>, transform_indices = @transform_1, window_bounds = array<i64: 64, 128>}, {pipeline_mode = #tpu.pipeline_mode<synchronous>, transform_indices = @transform_2, window_bounds = array<i64: 1, 128>}, {pipeline_mode = #tpu.pipeline_mode<synchronous>, transform_indices = @transform_3, window_bounds = array<i64: 128, 64>}, {pipeline_mode = #tpu.pipeline_mode<synchronous>, transform_indices = @transform_4, window_bounds = array<i64: 1, 64>}, {pipeline_mode = #tpu.pipeline_mode<synchronous>, transform_indices = @transform_5, window_bounds = array<i64: 1, 64>}, {pipeline_mode = #tpu.pipeline_mode<synchronous>, transform_indices = @transform_6, window_bounds = array<i64: 1, 1>}, {transform_indices = @transform_7, window_bounds = array<i64: 256, 1>}]} {
    %c0 = arith.constant 0 : index
    %c0_0 = arith.constant 0 : index
    %0 = vector.load %arg1[%c0, %c0_0] : memref<256x64xf32, #tpu.memory_space<vmem>>, vector<256x64xf32>
    %c0_1 = arith.constant 0 : index
    %c0_2 = arith.constant 0 : index
    %1 = vector.load %arg2[%c0_1, %c0_2] : memref<64x128xf32, #tpu.memory_space<vmem>>, vector<64x128xf32>
    %c0_3 = arith.constant 0 : index
    %c0_4 = arith.constant 0 : index
    %2 = vector.load %arg3[%c0_3, %c0_4] : memref<1x128xf32, #tpu.memory_space<vmem>>, vector<1x128xf32>
    %cst = arith.constant dense<0.000000e+00> : vector<256x128xf32>
    %3 = tpu.matmul %0, %1, %cst {dimension_numbers = #tpu.dot_dimension_numbers<[1], [0], [0], [1], [0, 0, 1, 1], [], []>} : vector<256x64xf32>, vector<64x128xf32>, vector<256x128xf32> -> vector<256x128xf32>
    %4 = vector.broadcast %2 : vector<1x128xf32> to vector<256x128xf32>
    %5 = arith.addf %3, %4 : vector<256x128xf32>
    %cst_5 = arith.constant 2.000000e-01 : f32
    %6 = vector.broadcast %cst_5 : f32 to vector<256x128xf32>
    %7 = arith.mulf %6, %5 : vector<256x128xf32>
    %8 = arith.maximumf %5, %7 : vector<256x128xf32>
    %c0_6 = arith.constant 0 : index
    %c0_7 = arith.constant 0 : index
    %9 = vector.load %arg4[%c0_6, %c0_7] : memref<128x64xf32, #tpu.memory_space<vmem>>, vector<128x64xf32>
    %c0_8 = arith.constant 0 : index
    %c0_9 = arith.constant 0 : index
    %10 = vector.load %arg5[%c0_8, %c0_9] : memref<1x64xf32, #tpu.memory_space<vmem>>, vector<1x64xf32>
    %cst_10 = arith.constant dense<0.000000e+00> : vector<256x64xf32>
    %11 = tpu.matmul %8, %9, %cst_10 {dimension_numbers = #tpu.dot_dimension_numbers<[1], [0], [0], [1], [0, 0, 1, 1], [], []>} : vector<256x128xf32>, vector<128x64xf32>, vector<256x64xf32> -> vector<256x64xf32>
    %12 = vector.broadcast %10 : vector<1x64xf32> to vector<256x64xf32>
    %13 = arith.addf %11, %12 : vector<256x64xf32>
    %cst_11 = arith.constant 2.000000e-01 : f32
    %14 = vector.broadcast %cst_11 : f32 to vector<256x64xf32>
    %15 = arith.mulf %14, %13 : vector<256x64xf32>
    %16 = arith.maximumf %13, %15 : vector<256x64xf32>
    %c0_12 = arith.constant 0 : index
    %c0_13 = arith.constant 0 : index
    %17 = vector.load %arg6[%c0_12, %c0_13] : memref<1x64xf32, #tpu.memory_space<vmem>>, vector<1x64xf32>
    %c0_14 = arith.constant 0 : index
    %c0_15 = arith.constant 0 : index
    %18 = vector.load %arg7[%c0_14, %c0_15] : memref<1x1xf32, #tpu.memory_space<vmem>>, vector<1x1xf32>
    %19 = vector.broadcast %17 : vector<1x64xf32> to vector<256x64xf32>
    %20 = arith.mulf %16, %19 : vector<256x64xf32>
    %cst_16 = arith.constant dense<0.000000e+00> : vector<256xf32>
    %21 = vector.multi_reduction <add>, %20, %cst_16 [1] : vector<256x64xf32> to vector<256xf32>
    %22 = vector.shape_cast %21 : vector<256xf32> to vector<256x1xf32>
    %23 = vector.broadcast %18 : vector<1x1xf32> to vector<256x1xf32>
    %24 = arith.addf %22, %23 : vector<256x1xf32>
    %cst_17 = arith.constant 0.000000e+00 : f32
    %25 = vector.broadcast %cst_17 : f32 to vector<256x1xf32>
    %26 = arith.subf %25, %24 : vector<256x1xf32>
    %27 = math.exp %26 : vector<256x1xf32>
    %cst_18 = arith.constant 1.000000e+00 : f32
    %28 = vector.broadcast %cst_18 : f32 to vector<256x1xf32>
    %29 = arith.addf %28, %27 : vector<256x1xf32>
    %30 = tpu.reciprocal %29 {approx = true} : vector<256x1xf32> -> vector<256x1xf32>
    %c0_19 = arith.constant 0 : index
    %c0_20 = arith.constant 0 : index
    %31 = vector.load %arg8[%c0_19, %c0_20] : memref<256x1xf32, #tpu.memory_space<vmem>>, vector<256x1xf32>
    tpu.vector_store %arg8[%c0_19, %c0_20], %30 {strides = array<i32>} : memref<256x1xf32, #tpu.memory_space<vmem>>, vector<256x1xf32>,
    return
  }
  func.func @transform_0(%arg0: i32) -> (i32, i32) {
    %c0_i32 = arith.constant 0 : i32
    %c0_i32_0 = arith.constant 0 : i32
    return %arg0, %c0_i32 : i32, i32
  }
  func.func @transform_1(%arg0: i32) -> (i32, i32) {
    %c0_i32 = arith.constant 0 : i32
    %c0_i32_0 = arith.constant 0 : i32
    %c0_i32_1 = arith.constant 0 : i32
    return %c0_i32, %c0_i32_0 : i32, i32
  }
  func.func @transform_2(%arg0: i32) -> (i32, i32) {
    %c0_i32 = arith.constant 0 : i32
    %c0_i32_0 = arith.constant 0 : i32
    %c0_i32_1 = arith.constant 0 : i32
    return %c0_i32, %c0_i32_0 : i32, i32
  }
  func.func @transform_3(%arg0: i32) -> (i32, i32) {
    %c0_i32 = arith.constant 0 : i32
    %c0_i32_0 = arith.constant 0 : i32
    %c0_i32_1 = arith.constant 0 : i32
    return %c0_i32, %c0_i32_0 : i32, i32
  }
  func.func @transform_4(%arg0: i32) -> (i32, i32) {
    %c0_i32 = arith.constant 0 : i32
    %c0_i32_0 = arith.constant 0 : i32
    %c0_i32_1 = arith.constant 0 : i32
    return %c0_i32, %c0_i32_0 : i32, i32
  }
  func.func @transform_5(%arg0: i32) -> (i32, i32) {
    %c0_i32 = arith.constant 0 : i32
    %c0_i32_0 = arith.constant 0 : i32
    %c0_i32_1 = arith.constant 0 : i32
    return %c0_i32, %c0_i32_0 : i32, i32
  }
  func.func @transform_6(%arg0: i32) -> (i32, i32) {
    %c0_i32 = arith.constant 0 : i32
    %c0_i32_0 = arith.constant 0 : i32
    %c0_i32_1 = arith.constant 0 : i32
    return %c0_i32, %c0_i32_0 : i32, i32
  }
  func.func @transform_7(%arg0: i32) -> (i32, i32) {
    %c0_i32 = arith.constant 0 : i32
    %c0_i32_0 = arith.constant 0 : i32
    return %arg0, %c0_i32 : i32, i32
  }
}

</mosaic_0001>

<bundles_post_ra>
// kernel: tpu_custom_call.1
= control target key start
LH: loop header
LB: loop body
LE: loop exit
PB: predicated region body
PF: predicated region fallthrough
CT: control target
= control target key end

     0   :  { %s1982_s26 = smov 0   ;;  %s2387_s0 = inlined_call_operand.vmem [shape: f32[512,64], index: 0, kind: input, shape index: {}]   ;;  %s2388_s1 = inlined_call_operand.vmem [shape: f32[64,128], index: 1, kind: input, shape index: {}]   ;;  %s2389_s2 = inlined_call_operand.vmem [shape: f32[1,128], index: 2, kind: input, shape index: {}]   ;;  %s2390_s3 = inlined_call_operand.vmem [shape: f32[128,64], index: 3, kind: input, shape index: {}]   ;;  %s2391_s4 = inlined_call_operand.vmem [shape: f32[1,64], index: 4, kind: input, shape index: {}]   ;;  %s2392_s5 = inlined_call_operand.vmem [shape: f32[1,64], index: 5, kind: input, shape index: {}]   ;;  %s2393_s6 = inlined_call_operand.<no memory space> [shape: f32[1,1], index: 6, kind: input, shape index: {}]   ;;  %s2394_s7 = inlined_call_operand.vmem [shape: f32[512,1], index: 7, kind: output, shape index: {}]  }
   0x1   :  { %v12_v0 = vstv %s2393_s6 }
   0x2   :  { %13 = vst [vmem:[#allocation2] sm:$0x1] %v12_v0 }
   0x3 LB: > { %s1452_s27 = sadd.s32 4294967295, %s1937_s26   ;;  %p1456_p0 = scmp.ge.s32.totalorder %s1937_s26, 1  ;;  %s1937_s26 = sphi %s1982_s26, %s19_s26  }
   0x4   : > { %p240_p1 = scmp.lt.s32.totalorder %s1937_s26, 3 }
   0x6   : > { %p241_p2 = pnand %p1456_p0, %p240_p1 }
   0x7   : > { %v316_v1 = vld [vmem:[%s2388_s1] sm:$0xff] (!%p241_p2)  ;;  %v317_v2 = vld [vmem:[%s2388_s1 + $0x8] sm:$0xff] (!%p241_p2)  ;;  %v318_v3 = vld [vmem:[%s2388_s1 + $0x10] sm:$0xff] (!%p241_p2)  ;;  %s1457_s10 = sshll.u32 (!%p241_p2), %s1452_s27, 5  ;;  %vm331_vm0 = vcmask (!%p241_p2), 523264   ;;  %vm1363_vm1 = vcmask (!%p241_p2), 7168  }
   0x8   : > { %244 = sbr.rel (%p241_p2) target bundleno = 706 (0x2c2), region = 48  ;;  %v1731_v4 = vpack.c.bf16 (!%p241_p2), %v317_v2, %v316_v1  ;;  %v319_v5 = vld [vmem:[%s2388_s1 + $0x18] sm:$0xff] (!%p241_p2)  ;;  %p273_p3 = scmp.lt.s32.totalorder (!%p241_p2), %s1457_s10, 63  ;;  %v320_v7 = vld [vmem:[%s2388_s1 + $0x20] sm:$0xff] (!%p241_p2)  ;;  %v321_v8 = vld [vmem:[%s2388_s1 + $0x28] sm:$0xff] (!%p241_p2) }
   0x9   : > { %v1735_v6 = vpack.c.bf16 (!%p241_p2), %v319_v5, %v318_v3  ;;  %v717_v9 = vld [vmem:[%s2390_s3] sm:$0xff] (!%p241_p2)  ;;  %v718_v10 = vld [vmem:[%s2390_s3 + $0x8] sm:$0xff] (!%p241_p2)  ;;  %v719_v12 = vld [vmem:[%s2390_s3 + $0x10] sm:$0xff] (!%p241_p2)  ;;  %v1739_v14 = vpack.c.bf16 (!%p241_p2), %v321_v8, %v320_v7 }
   0xa   : > { %1732 = vmatprep.subr.bf16.mxu0 (!%p241_p2), %v1731_v4  ;;  %v1747_v11 = vpack.c.bf16 (!%p241_p2), %v718_v10, %v717_v9  ;;  %v720_v13 = vld [vmem:[%s2390_s3 + $0x18] sm:$0xff] (!%p241_p2)  ;;  %v322_v15 = vld [vmem:[%s2388_s1 + $0x30] sm:$0xff] (!%p241_p2)  ;;  %v721_v19 = vld [vmem:[%s2390_s3 + $0x20] sm:$0xff] (!%p241_p2) }
   0xb   : > { %1734 = vmatpush3.bf16.msra.mxu0 (!%p241_p2), %v1731_v4  ;;  %v323_v16 = vld [vmem:[%s2388_s1 + $0x38] sm:$0xff] (!%p241_p2)  ;;  %v1751_v18 = vpack.c.bf16 (!%p241_p2), %v720_v13, %v719_v12  ;;  %v722_v20 = vld [vmem:[%s2390_s3 + $0x28] sm:$0xff] (!%p241_p2)  ;;  %v723_v23 = vld [vmem:[%s2390_s3 + $0x30] sm:$0xff] (!%p241_p2) }
   0xc   : > { %1736 = vmatprep.subr.bf16.mxu0 (!%p241_p2), %v1735_v6  ;;  %1779 = vmatprep.subr.bf16.mxu1 (!%p241_p2), %v1747_v11  ;;  %v1743_v21 = vpack.c.bf16 (!%p241_p2), %v323_v16, %v322_v15  ;;  %v1755_v22 = vpack.c.bf16 (!%p241_p2), %v722_v20, %v721_v19  ;;  %v724_v24 = vld [vmem:[%s2390_s3 + $0x38] sm:$0xff] (!%p241_p2)  ;;  %v725_v27 = vld [vmem:[%s2390_s3 + $0x40] sm:$0xff] (!%p241_p2)  ;;  %v726_v28 = vld [vmem:[%s2390_s3 + $0x48] sm:$0xff] (!%p241_p2) }
   0xd   : > { %1787 = vmatpush3.bf16.msra.mxu1 (!%p241_p2), %v1747_v11  ;;  %v1759_v25 = vpack.c.bf16 (!%p241_p2), %v724_v24, %v723_v23  ;;  %v1763_v30 = vpack.c.bf16 (!%p241_p2), %v726_v28, %v725_v27  ;;  %v727_v32 = vld [vmem:[%s2390_s3 + $0x50] sm:$0xff] (!%p241_p2)  ;;  %v728_v33 = vld [vmem:[%s2390_s3 + $0x58] sm:$0xff] (!%p241_p2)  ;;  %v729_v37 = vld [vmem:[%s2390_s3 + $0x60] sm:$0xff] (!%p241_p2) }
   0xe   : > { %1780 = vmatprep.subr.bf16.mxu1 (!%p241_p2), %v1751_v18  ;;  %v1767_v35 = vpack.c.bf16 (!%p241_p2), %v728_v33, %v727_v32  ;;  %v730_v38 = vld [vmem:[%s2390_s3 + $0x68] sm:$0xff] (!%p241_p2)  ;;  %v731_v2 = vld [vmem:[%s2390_s3 + $0x70] sm:$0xff] (!%p241_p2)  ;;  %v732_v3 = vld [vmem:[%s2390_s3 + $0x78] sm:$0xff] (!%p241_p2) }
   0xf   : > { %s2396_s10 = smov (!%p273_p3, %s1457_s10), 63  ;;  %1738 = vmatpush3.bf16.msra.mxu0 %v1735_v6  ;;  %v1771_v40 = vpack.c.bf16 %v730_v38, %v729_v37  ;;  %v1775_v4 = vpack.c.bf16 %v732_v3, %v731_v2  ;;  %v2139_v5 = vld [vmem:[%s2389_s2] ss:$0 sm:$0xff] }
  0x10   : > { %s1458_s25 = sshll.u32 %s2396_s10, 3  ;;  %1740 = vmatprep.subr.bf16.mxu0 %v1739_v14 }
  0x11   : > { %s2034_s9 = scalar_lea.vmem %s2387_s0, %s1458_s25  ;;  %1788 = vmatpush3.bf16.msra.mxu1 %v1751_v18  ;;  %s2299_s22 = scalar_lea.vmem %s2394_s7, %s1458_s25 }
  0x12   : > { %v284_v17 = vld [vmem:[%s2034_s9] sm:$0xff]  ;;  %1781 = vmatprep.subr.bf16.mxu1 %v1755_v22  ;;  %v285_v26 = vld [vmem:[%s2034_s9 + $0x8] sm:$0xff]  ;;  %v286_v29 = vld [vmem:[%s2034_s9 + $0x10] sm:$0xff] }
  0x13   : > { %1603 = vmatprep.mubr.msk.f32.mxu0 %vm331_vm0, %v284_v17  ;;  %1742 = vmatpush3.bf16.msra.mxu0 %v1739_v14  ;;  %v287_v31 = vld [vmem:[%s2034_s9 + $0x18] sm:$0xff]  ;;  %v288_v34 = vld [vmem:[%s2034_s9 + $0x20] sm:$0xff]  ;;  %v289_v36 = vld [vmem:[%s2034_s9 + $0x28] sm:$0xff] }
  0x14   : > { %1744 = vmatprep.subr.bf16.mxu0 %v1743_v21  ;;  %v290_v39 = vld [vmem:[%s2034_s9 + $0x30] sm:$0xff]  ;;  %v291_v41 = vld [vmem:[%s2034_s9 + $0x38] sm:$0xff]  ;;  %v292_v42 = vld [vmem:[%s2034_s9 + $0x40] sm:$0xff] }
  0x15   : > { %1789 = vmatpush3.bf16.msra.mxu1 %v1755_v22  ;;  %v293_v43 = vld [vmem:[%s2034_s9 + $0x48] sm:$0xff]  ;;  %v294_v44 = vld [vmem:[%s2034_s9 + $0x50] sm:$0xff]  ;;  %v295_v45 = vld [vmem:[%s2034_s9 + $0x58] sm:$0xff] }
  0x16   : > { %1782 = vmatprep.subr.bf16.mxu1 %v1759_v25  ;;  %v296_v46 = vld [vmem:[%s2034_s9 + $0x60] sm:$0xff]  ;;  %v297_v47 = vld [vmem:[%s2034_s9 + $0x68] sm:$0xff]  ;;  %v298_v48 = vld [vmem:[%s2034_s9 + $0x70] sm:$0xff] }
  0x17   : > { %1746 = vmatpush3.bf16.msra.mxu0 %v1743_v21  ;;  %v299_v49 = vld [vmem:[%s2034_s9 + $0x78] sm:$0xff]  ;;  %v300_v50 = vld [vmem:[%s2034_s9 + $0x80] sm:$0xff]  ;;  %v301_v51 = vld [vmem:[%s2034_s9 + $0x88] sm:$0xff] }
  0x18   : > { %1748 = vmatprep.subr.bf16.mxu0 %v1747_v11  ;;  %v302_v52 = vld [vmem:[%s2034_s9 + $0x90] sm:$0xff]  ;;  %v303_v53 = vld [vmem:[%s2034_s9 + $0x98] sm:$0xff]  ;;  %v304_v54 = vld [vmem:[%s2034_s9 + $0xa0] sm:$0xff] }
  0x19   : > { %1790 = vmatpush3.bf16.msra.mxu1 %v1759_v25  ;;  %v305_v55 = vld [vmem:[%s2034_s9 + $0xa8] sm:$0xff]  ;;  %v306_v56 = vld [vmem:[%s2034_s9 + $0xb0] sm:$0xff]  ;;  %v307_v57 = vld [vmem:[%s2034_s9 + $0xb8] sm:$0xff] }
  0x1a   : > { %1604 = vmatmul.mubr.msk.f32.vlgmr.msra.gmra.mrb[0].mxu0 %vm331_vm0, %v285_v26  ;;  %1783 = vmatprep.subr.bf16.mxu1 %v1763_v30  ;;  %v308_v58 = vld [vmem:[%s2034_s9 + $0xc0] sm:$0xff]  ;;  %v309_v59 = vld [vmem:[%s2034_s9 + $0xc8] sm:$0xff]  ;;  %v310_v60 = vld [vmem:[%s2034_s9 + $0xd0] sm:$0xff] }
  0x1b   : > { %1606 = vmatprep.mubr.msk.f32.mxu0 %vm331_vm0, %v286_v29  ;;  %1750 = vmatpush3.bf16.msra.mxu0 %v1747_v11  ;;  %v311_v61 = vld [vmem:[%s2034_s9 + $0xd8] sm:$0xff]  ;;  %v312_v62 = vld [vmem:[%s2034_s9 + $0xe0] sm:$0xff]  ;;  %v313_v63 = vld [vmem:[%s2034_s9 + $0xe8] sm:$0xff] }
  0x1c   : > { %1752 = vmatprep.subr.bf16.mxu0 %v1751_v18  ;;  %v314_v0 = vld [vmem:[%s2034_s9 + $0xf0] sm:$0xff]  ;;  %v315_v1 = vld [vmem:[%s2034_s9 + $0xf8] sm:$0xff] }
  0x1d   : > { %1791 = vmatpush3.bf16.msra.mxu1 %v1763_v30 }
  0x1e   : > { %1607 = vmatmul.mubr.msk.f32.gmra.mrb[2].mxu0 %vm331_vm0, %v287_v31  ;;  %1784 = vmatprep.subr.bf16.mxu1 %v1767_v35 }
  0x1f   : > { %1609 = vmatprep.mubr.msk.f32.mxu0 %vm331_vm0, %v288_v34  ;;  %1754 = vmatpush3.bf16.msra.mxu0 %v1751_v18 }
  0x20   : > { %1756 = vmatprep.subr.bf16.mxu0 %v1755_v22 }
  0x21   : > { %1792 = vmatpush3.bf16.msra.mxu1 %v1767_v35 }
  0x22   : > { %1610 = vmatmul.mubr.msk.f32.gmra.mrb[4].mxu0 %vm331_vm0, %v289_v36  ;;  %1785 = vmatprep.subr.bf16.mxu1 %v1771_v40 }
  0x23   : > { %1612 = vmatprep.mubr.msk.f32.mxu0 %vm331_vm0, %v290_v39  ;;  %1758 = vmatpush3.bf16.msra.mxu0 %v1755_v22 }
  0x24   : > { %1760 = vmatprep.subr.bf16.mxu0 %v1759_v25 }
  0x25   : > { %1793 = vmatpush3.bf16.msra.mxu1 %v1771_v40 }
  0x26   : > { %1613 = vmatmul.mubr.msk.f32.gmra.mrb[6].mxu0 %vm331_vm0, %v291_v41  ;;  %1786 = vmatprep.subr.bf16.mxu1 %v1775_v4 }
  0x27   : > { %1615 = vmatprep.mubr.msk.f32.mxu0 %vm331_vm0, %v292_v42  ;;  %1762 = vmatpush3.bf16.msra.mxu0 %v1759_v25 }
  0x28   : > { %1764 = vmatprep.subr.bf16.mxu0 %v1763_v30 }
  0x29   : > { %1794 = vmatpush3.bf16.msra.mxu1 %v1775_v4 }
  0x2a   : > { %1616 = vmatmul.mubr.msk.f32.gmra.mrb[8].mxu0 %vm331_vm0, %v293_v43 }
  0x2b   : > { %1618 = vmatprep.mubr.msk.f32.mxu0 %vm331_vm0, %v294_v44  ;;  %1766 = vmatpush3.bf16.msra.mxu0 %v1763_v30 }
  0x2c   : > { %1768 = vmatprep.subr.bf16.mxu0 %v1767_v35 }
  0x2e   : > { %1619 = vmatmul.mubr.msk.f32.gmra.mrb[10].mxu0 %vm331_vm0, %v295_v45 }
  0x2f   : > { %1621 = vmatprep.mubr.msk.f32.mxu0 %vm331_vm0, %v296_v46  ;;  %1770 = vmatpush3.bf16.msra.mxu0 %v1767_v35 }
  0x30   : > { %1772 = vmatprep.subr.bf16.mxu0 %v1771_v40 }
  0x32   : > { %1622 = vmatmul.mubr.msk.f32.gmra.mrb[12].mxu0 %vm331_vm0, %v297_v47 }
  0x33   : > { %1624 = vmatprep.mubr.msk.f32.mxu0 %vm331_vm0, %v298_v48  ;;  %1774 = vmatpush3.bf16.msra.mxu0 %v1771_v40 }
  0x34   : > { %1776 = vmatprep.subr.bf16.mxu0 %v1775_v4 }
  0x36   : > { %1625 = vmatmul.mubr.msk.f32.gmra.mrb[14].mxu0 %vm331_vm0, %v299_v49 }
  0x37   : > { %1627 = vmatprep.mubr.msk.f32.mxu0 %vm331_vm0, %v300_v50  ;;  %1778 = vmatpush3.bf16.msra.mxu0 %v1775_v4 }
  0x3a   : > { %1628 = vmatmul.mubr.msk.f32.gmra.mrb[16].mxu0 %vm331_vm0, %v301_v51 }
  0x3b   : > { %1630 = vmatprep.mubr.msk.f32.mxu0 %vm331_vm0, %v302_v52 }
  0x3e   : > { %1631 = vmatmul.mubr.msk.f32.gmra.mrb[18].mxu0 %vm331_vm0, %v303_v53 }
  0x3f   : > { %1633 = vmatprep.mubr.msk.f32.mxu0 %vm331_vm0, %v304_v54 }
  0x42   : > { %1634 = vmatmul.mubr.msk.f32.gmra.mrb[20].mxu0 %vm331_vm0, %v305_v55 }
  0x43   : > { %1636 = vmatprep.mubr.msk.f32.mxu0 %vm331_vm0, %v306_v56 }
  0x46   : > { %1637 = vmatmul.mubr.msk.f32.gmra.mrb[22].mxu0 %vm331_vm0, %v307_v57 }
  0x47   : > { %1639 = vmatprep.mubr.msk.f32.mxu0 %vm331_vm0, %v308_v58 }
  0x4a   : > { %1640 = vmatmul.mubr.msk.f32.gmra.mrb[24].mxu0 %vm331_vm0, %v309_v59 }
  0x4b   : > { %1642 = vmatprep.mubr.msk.f32.mxu0 %vm331_vm0, %v310_v60 }
  0x4e   : > { %1643 = vmatmul.mubr.msk.f32.gmra.mrb[26].mxu0 %vm331_vm0, %v311_v61 }
  0x4f   : > { %1645 = vmatprep.mubr.msk.f32.mxu0 %vm331_vm0, %v312_v62 }
  0x52   : > { %1646 = vmatmul.mubr.msk.f32.gmra.mrb[28].mxu0 %vm331_vm0, %v313_v63 }
  0x53   : > { %1648 = vmatprep.mubr.msk.f32.mxu0 %vm331_vm0, %v314_v0 }
  0x56   : > { %1649 = vmatmul.mubr.msk.f32.gmra.mrb[30].mxu0 %vm331_vm0, %v315_v1 }
  0xed   : > { %v1605_v6 = vpop.f32.mrb[0].mxu0 }
  0xee   : > { %v500_v7 = vadd.f32 %v1605_v6, %v2139_v5  ;;  %v494_v8 = vpop.f32.mrb[1].mxu0 }
  0xef   : > { %v495_v9 = vadd.f32 %v2139_v5, %v494_v8 }
  0xf0   : > { %v654_v10 = vmul.f32 0.2, %v500_v7 }
  0xf1   : > { %v653_v11 = vmul.f32 0.2, %v495_v9  ;;  %v1608_v12 = vpop.f32.mrb[2].mxu0 }
  0xf2   : > { %v510_v13 = vadd.f32 %v1608_v12, %v2139_v5  ;;  %v504_v14 = vpop.f32.mrb[3].mxu0  ;;  %v686_v17 = vmax.f32 %v500_v7, %v654_v10 }
  0xf3   : > { %v685_v15 = vmax.f32 %v495_v9, %v653_v11  ;;  %v505_v16 = vadd.f32 %v2139_v5, %v504_v14 }
  0xf4   : > { %v656_v18 = vmul.f32 0.2, %v510_v13 }
  0xf5   : > { %v655_v19 = vmul.f32 0.2, %v505_v16  ;;  %v1611_v20 = vpop.f32.mrb[4].mxu0  ;;  %1683 = vmatprep.mubr.f32.mxu0 %v685_v15 }
  0xf6   : > { %v520_v21 = vadd.f32 %v1611_v20, %v2139_v5  ;;  %v514_v22 = vpop.f32.mrb[5].mxu0  ;;  %1684 = vmatmul.mubr.f32.vlgmr.msra.gmra.mrb[32].mxu0 %v686_v17  ;;  %v688_v25 = vmax.f32 %v510_v13, %v656_v18 }
  0xf7   : > { %v687_v23 = vmax.f32 %v505_v16, %v655_v19  ;;  %v515_v24 = vadd.f32 %v2139_v5, %v514_v22 }
  0xf8   : > { %v658_v26 = vmul.f32 0.2, %v520_v21 }
  0xf9   : > { %v1614_v27 = vpop.f32.mrb[6].mxu0  ;;  %1686 = vmatprep.mubr.f32.mxu0 %v687_v23  ;;  %v657_v28 = vmul.f32 0.2, %v515_v24 }
  0xfa   : > { %v690_v29 = vmax.f32 %v520_v21, %v658_v26  ;;  %v530_v30 = vadd.f32 %v1614_v27, %v2139_v5  ;;  %v524_v31 = vpop.f32.mrb[7].mxu0  ;;  %1687 = vmatmul.mubr.f32.gmra.mrb[34].mxu0 %v688_v25 }
  0xfb   : > { %v525_v32 = vadd.f32 %v2139_v5, %v524_v31  ;;  %v689_v33 = vmax.f32 %v515_v24, %v657_v28 }
  0xfc   : > { %v660_v34 = vmul.f32 0.2, %v530_v30 }
  0xfd   : > { %v659_v35 = vmul.f32 0.2, %v525_v32  ;;  %v1617_v36 = vpop.f32.mrb[8].mxu0  ;;  %1689 = vmatprep.mubr.f32.mxu1 %v689_v33 }
  0xfe   : > { %v692_v37 = vmax.f32 %v530_v30, %v660_v34  ;;  %v540_v38 = vadd.f32 %v1617_v36, %v2139_v5  ;;  %v534_v39 = vpop.f32.mrb[9].mxu0  ;;  %1690 = vmatmul.mubr.f32.vlgmr.msra.gmra.mrb[0].mxu1 %v690_v29 }
  0xff   : > { %v691_v40 = vmax.f32 %v525_v32, %v659_v35  ;;  %v535_v41 = vadd.f32 %v2139_v5, %v534_v39 }
 0x100   : > { %v662_v42 = vmul.f32 0.2, %v540_v38 }
 0x101   : > { %v661_v43 = vmul.f32 0.2, %v535_v41  ;;  %v1620_v44 = vpop.f32.mrb[10].mxu0  ;;  %1692 = vmatprep.mubr.f32.mxu1 %v691_v40 }
 0x102   : > { %v694_v45 = vmax.f32 %v540_v38, %v662_v42  ;;  %v550_v46 = vadd.f32 %v1620_v44, %v2139_v5  ;;  %v544_v47 = vpop.f32.mrb[11].mxu0  ;;  %1693 = vmatmul.mubr.f32.gmra.mrb[2].mxu1 %v692_v37 }
 0x103   : > { %v693_v48 = vmax.f32 %v535_v41, %v661_v43  ;;  %v545_v49 = vadd.f32 %v2139_v5, %v544_v47 }
 0x104   : > { %v664_v50 = vmul.f32 0.2, %v550_v46 }
 0x105   : > { %v663_v51 = vmul.f32 0.2, %v545_v49  ;;  %v1623_v52 = vpop.f32.mrb[12].mxu0  ;;  %1695 = vmatprep.mubr.f32.mxu1 %v693_v48 }
 0x106   : > { %v696_v53 = vmax.f32 %v550_v46, %v664_v50  ;;  %v560_v54 = vadd.f32 %v1623_v52, %v2139_v5  ;;  %v554_v55 = vpop.f32.mrb[13].mxu0  ;;  %1696 = vmatmul.mubr.f32.gmra.mrb[4].mxu1 %v694_v45 }
 0x107   : > { %v695_v56 = vmax.f32 %v545_v49, %v663_v51  ;;  %v555_v57 = vadd.f32 %v2139_v5, %v554_v55 }
 0x108   : > { %v666_v58 = vmul.f32 0.2, %v560_v54 }
 0x109   : > { %v665_v59 = vmul.f32 0.2, %v555_v57  ;;  %v1626_v60 = vpop.f32.mrb[14].mxu0  ;;  %1698 = vmatprep.mubr.f32.mxu1 %v695_v56 }
 0x10a   : > { %v698_v61 = vmax.f32 %v560_v54, %v666_v58  ;;  %v570_v62 = vadd.f32 %v1626_v60, %v2139_v5  ;;  %v564_v63 = vpop.f32.mrb[15].mxu0  ;;  %1699 = vmatmul.mubr.f32.gmra.mrb[6].mxu1 %v696_v53 }
 0x10b   : > { %v697_v0 = vmax.f32 %v555_v57, %v665_v59  ;;  %v565_v1 = vadd.f32 %v2139_v5, %v564_v63 }
 0x10c   : > { %v668_v2 = vmul.f32 0.2, %v570_v62 }
 0x10d   : > { %v667_v3 = vmul.f32 0.2, %v565_v1  ;;  %v1629_v4 = vpop.f32.mrb[16].mxu0  ;;  %1701 = vmatprep.mubr.f32.mxu1 %v697_v0 }
 0x10e   : > { %v700_v6 = vmax.f32 %v570_v62, %v668_v2  ;;  %v580_v7 = vadd.f32 %v1629_v4, %v2139_v5  ;;  %v574_v8 = vpop.f32.mrb[17].mxu0  ;;  %1702 = vmatmul.mubr.f32.gmra.mrb[8].mxu1 %v698_v61 }
 0x10f   : > { %v699_v9 = vmax.f32 %v565_v1, %v667_v3  ;;  %v575_v10 = vadd.f32 %v2139_v5, %v574_v8  ;;  %v2176_v8 = vld [vmem:[%s2391_s4] ss:$0 sm:$0xff] }
 0x110   : > { %v670_v11 = vmul.f32 0.2, %v580_v7 }
 0x111   : > { %v669_v12 = vmul.f32 0.2, %v575_v10  ;;  %v1632_v13 = vpop.f32.mrb[18].mxu0  ;;  %1704 = vmatprep.mubr.f32.mxu1 %v699_v9 }
 0x112   : > { %v702_v14 = vmax.f32 %v580_v7, %v670_v11  ;;  %v590_v15 = vadd.f32 %v1632_v13, %v2139_v5  ;;  %v584_v16 = vpop.f32.mrb[19].mxu0  ;;  %1705 = vmatmul.mubr.f32.gmra.mrb[10].mxu1 %v700_v6 }
 0x113   : > { %v701_v17 = vmax.f32 %v575_v10, %v669_v12  ;;  %v585_v18 = vadd.f32 %v2139_v5, %v584_v16 }
 0x114   : > { %v672_v19 = vmul.f32 0.2, %v590_v15 }
 0x115   : > { %v671_v20 = vmul.f32 0.2, %v585_v18  ;;  %v1635_v21 = vpop.f32.mrb[20].mxu0  ;;  %1707 = vmatprep.mubr.f32.mxu1 %v701_v17 }
 0x116   : > { %v704_v22 = vmax.f32 %v590_v15, %v672_v19  ;;  %v600_v23 = vadd.f32 %v1635_v21, %v2139_v5  ;;  %v594_v24 = vpop.f32.mrb[21].mxu0  ;;  %1708 = vmatmul.mubr.f32.gmra.mrb[12].mxu1 %v702_v14  ;;  %v2183_v15 = vld [vmem:[%s2392_s5] ss:$0 sm:$0xff] }
 0x117   : > { %v703_v25 = vmax.f32 %v585_v18, %v671_v20  ;;  %v595_v26 = vadd.f32 %v2139_v5, %v594_v24 }
 0x118   : > { %v674_v27 = vmul.f32 0.2, %v600_v23 }
 0x119   : > { %v673_v28 = vmul.f32 0.2, %v595_v26  ;;  %v1638_v29 = vpop.f32.mrb[22].mxu0  ;;  %1710 = vmatprep.mubr.f32.mxu1 %v703_v25 }
 0x11a   : > { %v706_v30 = vmax.f32 %v600_v23, %v674_v27  ;;  %v610_v31 = vadd.f32 %v1638_v29, %v2139_v5  ;;  %v604_v32 = vpop.f32.mrb[23].mxu0  ;;  %1711 = vmatmul.mubr.f32.gmra.mrb[14].mxu1 %v704_v22 }
 0x11b   : > { %v705_v33 = vmax.f32 %v595_v26, %v673_v28  ;;  %v605_v34 = vadd.f32 %v2139_v5, %v604_v32 }
 0x11c   : > { %v676_v35 = vmul.f32 0.2, %v610_v31 }
 0x11d   : > { %v675_v36 = vmul.f32 0.2, %v605_v34  ;;  %v1641_v37 = vpop.f32.mrb[24].mxu0  ;;  %1713 = vmatprep.mubr.f32.mxu1 %v705_v33 }
 0x11e   : > { %v708_v38 = vmax.f32 %v610_v31, %v676_v35  ;;  %v620_v39 = vadd.f32 %v1641_v37, %v2139_v5  ;;  %v614_v40 = vpop.f32.mrb[25].mxu0  ;;  %1714 = vmatmul.mubr.f32.gmra.mrb[16].mxu1 %v706_v30 }
 0x11f   : > { %v707_v41 = vmax.f32 %v605_v34, %v675_v36  ;;  %v615_v42 = vadd.f32 %v2139_v5, %v614_v40 }
 0x120   : > { %v678_v43 = vmul.f32 0.2, %v620_v39 }
 0x121   : > { %v677_v44 = vmul.f32 0.2, %v615_v42  ;;  %v1644_v45 = vpop.f32.mrb[26].mxu0  ;;  %1716 = vmatprep.mubr.f32.mxu1 %v707_v41 }
 0x122   : > { %v710_v46 = vmax.f32 %v620_v39, %v678_v43  ;;  %v630_v47 = vadd.f32 %v1644_v45, %v2139_v5  ;;  %v624_v48 = vpop.f32.mrb[27].mxu0  ;;  %1717 = vmatmul.mubr.f32.gmra.mrb[18].mxu1 %v708_v38 }
 0x123   : > { %v709_v49 = vmax.f32 %v615_v42, %v677_v44  ;;  %v625_v50 = vadd.f32 %v2139_v5, %v624_v48 }
 0x124   : > { %v680_v51 = vmul.f32 0.2, %v630_v47 }
 0x125   : > { %v679_v52 = vmul.f32 0.2, %v625_v50  ;;  %v1647_v53 = vpop.f32.mrb[28].mxu0  ;;  %1719 = vmatprep.mubr.f32.mxu1 %v709_v49 }
 0x126   : > { %v712_v54 = vmax.f32 %v630_v47, %v680_v51  ;;  %v640_v55 = vadd.f32 %v1647_v53, %v2139_v5  ;;  %v634_v56 = vpop.f32.mrb[29].mxu0  ;;  %1720 = vmatmul.mubr.f32.gmra.mrb[20].mxu1 %v710_v46 }
 0x127   : > { %v711_v57 = vmax.f32 %v625_v50, %v679_v52  ;;  %v635_v58 = vadd.f32 %v2139_v5, %v634_v56 }
 0x128   : > { %v682_v59 = vmul.f32 0.2, %v640_v55 }
 0x129   : > { %v681_v60 = vmul.f32 0.2, %v635_v58  ;;  %v1650_v61 = vpop.f32.mrb[30].mxu0  ;;  %1722 = vmatprep.mubr.f32.mxu1 %v711_v57 }
 0x12a   : > { %v714_v62 = vmax.f32 %v640_v55, %v682_v59  ;;  %v650_v63 = vadd.f32 %v1650_v61, %v2139_v5  ;;  %v644_v0 = vpop.f32.mrb[31].mxu0  ;;  %1723 = vmatmul.mubr.f32.gmra.mrb[22].mxu1 %v712_v54 }
 0x12b   : > { %v713_v1 = vmax.f32 %v635_v58, %v681_v60  ;;  %v645_v2 = vadd.f32 %v2139_v5, %v644_v0 }
 0x12c   : > { %v684_v3 = vmul.f32 0.2, %v650_v63 }
 0x12d   : > { %v683_v4 = vmul.f32 0.2, %v645_v2  ;;  %1725 = vmatprep.mubr.f32.mxu1 %v713_v1 }
 0x12e   : > { %v716_v6 = vmax.f32 %v650_v63, %v684_v3  ;;  %1726 = vmatmul.mubr.f32.gmra.mrb[24].mxu1 %v714_v62 }
 0x12f   : > { %v715_v7 = vmax.f32 %v645_v2, %v683_v4 }
 0x131   : > { %1728 = vmatprep.mubr.f32.mxu1 %v715_v7 }
 0x132   : > { %1729 = vmatmul.mubr.f32.gmra.mrb[26].mxu1 %v716_v6 }
 0x1c9   : > { %v1685_v9 = vpop.f32.mrb[32].mxu0 }
 0x1ca   : > { %v812_v10 = vadd.f32 %v1685_v9, %v2176_v8  ;;  %v806_v11 = vpop.f32.mrb[33].mxu0 }
 0x1cb   : > { %v807_v12 = vadd.f32 %v2176_v8, %v806_v11 }
 0x1cc   : > { %v966_v5 = vmul.f32 0.2, %v812_v10 }
 0x1cd   : > { %v965_v13 = vmul.f32 0.2, %v807_v12  ;;  %v1688_v14 = vpop.f32.mrb[34].mxu0 }
 0x1ce   : > { %v998_v16 = vmax.f32 %v812_v10, %v966_v5  ;;  %v822_v17 = vadd.f32 %v1688_v14, %v2176_v8  ;;  %v816_v18 = vpop.f32.mrb[35].mxu0 }
 0x1cf   : > { %v997_v19 = vmax.f32 %v807_v12, %v965_v13  ;;  %v817_v20 = vadd.f32 %v2176_v8, %v816_v18 }
 0x1d0   : > { %v968_v21 = vmul.f32 0.2, %v822_v17  ;;  %v1038_v22 = vmul.f32 %v2183_v15, %v998_v16 }
 0x1d1   : > { %v967_v23 = vmul.f32 0.2, %v817_v20  ;;  %v1691_v24 = vpop.f32.mrb[0].mxu1  ;;  %v1037_v25 = vmul.f32 %v2183_v15, %v997_v19 }
 0x1d2   : > { %v1000_v26 = vmax.f32 %v822_v17, %v968_v21  ;;  %v832_v27 = vadd.f32 %v1691_v24, %v2176_v8  ;;  %v826_v28 = vpop.f32.mrb[1].mxu1  ;;  %v1072_v29 = vsel %vm331_vm0, %v1038_v22, 0.0 }
 0x1d3   : > { %v999_v30 = vmax.f32 %v817_v20, %v967_v23  ;;  %v827_v31 = vadd.f32 %v2176_v8, %v826_v28  ;;  %1073 = vadd.xlane.f32.xlu0 %v1072_v29  ;;  %v1069_v36 = vsel %vm331_vm0, %v1037_v25, 0.0 }
 0x1d4   : > { %v970_v32 = vmul.f32 0.2, %v832_v27  ;;  %v1040_v33 = vmul.f32 %v2183_v15, %v1000_v26 }
 0x1d5   : > { %v969_v34 = vmul.f32 0.2, %v827_v31  ;;  %v1694_v35 = vpop.f32.mrb[2].mxu1  ;;  %v1039_v41 = vmul.f32 %v2183_v15, %v999_v30 }
 0x1d6   : > { %v1002_v37 = vmax.f32 %v832_v27, %v970_v32  ;;  %v842_v38 = vadd.f32 %v1694_v35, %v2176_v8  ;;  %v836_v39 = vpop.f32.mrb[3].mxu1  ;;  %v1078_v40 = vsel %vm331_vm0, %v1040_v33, 0.0 }
 0x1d7   : > { %v1001_v42 = vmax.f32 %v827_v31, %v969_v34  ;;  %v837_v43 = vadd.f32 %v2176_v8, %v836_v39  ;;  %1079 = vadd.xlane.f32.xlu1 %v1078_v40  ;;  %1070 = vadd.xlane.f32.xlu0 %v1069_v36  ;;  %v1075_v51 = vsel %vm331_vm0, %v1039_v41, 0.0 }
 0x1d8   : > { %v972_v44 = vmul.f32 0.2, %v842_v38  ;;  %v1042_v52 = vmul.f32 %v2183_v15, %v1002_v37 }
 0x1d9   : > { %v971_v45 = vmul.f32 0.2, %v837_v43  ;;  %v1697_v46 = vpop.f32.mrb[4].mxu1  ;;  %v1041_v47 = vmul.f32 %v2183_v15, %v1001_v42 }
 0x1da   : > { %v1004_v48 = vmax.f32 %v842_v38, %v972_v44  ;;  %v852_v49 = vadd.f32 %v1697_v46, %v2176_v8  ;;  %v846_v50 = vpop.f32.mrb[5].mxu1  ;;  %v1084_v63 = vsel %vm331_vm0, %v1042_v52, 0.0 }
 0x1db   : > { %v1003_v53 = vmax.f32 %v837_v43, %v971_v45  ;;  %v847_v54 = vadd.f32 %v2176_v8, %v846_v50  ;;  %1076 = vadd.xlane.f32.xlu1 %v1075_v51  ;;  %v1081_v55 = vsel %vm331_vm0, %v1041_v47, 0.0 }
 0x1dc   : > { %v974_v56 = vmul.f32 0.2, %v852_v49  ;;  %1082 = vadd.xlane.f32.xlu0 %v1081_v55  ;;  %v1044_v0 = vmul.f32 %v2183_v15, %v1004_v48 }
 0x1dd   : > { %v973_v57 = vmul.f32 0.2, %v847_v54  ;;  %v1700_v58 = vpop.f32.mrb[6].mxu1  ;;  %v1043_v59 = vmul.f32 %v2183_v15, %v1003_v53 }
 0x1de   : > { %v1006_v60 = vmax.f32 %v852_v49, %v974_v56  ;;  %v862_v61 = vadd.f32 %v1700_v58, %v2176_v8  ;;  %v856_v62 = vpop.f32.mrb[7].mxu1  ;;  %v1090_v5 = vsel %vm331_vm0, %v1044_v0, 0.0 }
 0x1df   : > { %v1005_v1 = vmax.f32 %v847_v54, %v973_v57  ;;  %v857_v2 = vadd.f32 %v2176_v8, %v856_v62  ;;  %1085 = vadd.xlane.f32.xlu1 %v1084_v63  ;;  %v1087_v3 = vsel %vm331_vm0, %v1043_v59, 0.0 }
 0x1e0   : > { %v976_v4 = vmul.f32 0.2, %v862_v61  ;;  %1088 = vadd.xlane.f32.xlu0 %v1087_v3  ;;  %v1046_v13 = vmul.f32 %v2183_v15, %v1006_v60 }
 0x1e1   : > { %v975_v6 = vmul.f32 0.2, %v857_v2  ;;  %v1703_v7 = vpop.f32.mrb[8].mxu1  ;;  %v1045_v9 = vmul.f32 %v2183_v15, %v1005_v1 }
 0x1e2   : > { %v1008_v10 = vmax.f32 %v862_v61, %v976_v4  ;;  %v872_v11 = vadd.f32 %v1703_v7, %v2176_v8  ;;  %v866_v12 = vpop.f32.mrb[9].mxu1  ;;  %v1096_v25 = vsel %vm331_vm0, %v1046_v13, 0.0 }
 0x1e3   : > { %v1007_v14 = vmax.f32 %v857_v2, %v975_v6  ;;  %v867_v16 = vadd.f32 %v2176_v8, %v866_v12  ;;  %1091 = vadd.xlane.f32.xlu1 %v1090_v5  ;;  %v1093_v17 = vsel %vm331_vm0, %v1045_v9, 0.0 }
 0x1e4   : > { %v978_v18 = vmul.f32 0.2, %v872_v11  ;;  %1094 = vadd.xlane.f32.xlu0 %v1093_v17  ;;  %v1048_v26 = vmul.f32 %v2183_v15, %v1008_v10 }
 0x1e5   : > { %v977_v19 = vmul.f32 0.2, %v867_v16  ;;  %v1706_v20 = vpop.f32.mrb[10].mxu1  ;;  %v1047_v21 = vmul.f32 %v2183_v15, %v1007_v14 }
 0x1e6   : > { %v1010_v22 = vmax.f32 %v872_v11, %v978_v18  ;;  %v882_v23 = vadd.f32 %v1706_v20, %v2176_v8  ;;  %v876_v24 = vpop.f32.mrb[11].mxu1  ;;  %v1102_v37 = vsel %vm331_vm0, %v1048_v26, 0.0 }
 0x1e7   : > { %v1009_v27 = vmax.f32 %v867_v16, %v977_v19  ;;  %v877_v28 = vadd.f32 %v2176_v8, %v876_v24  ;;  %1097 = vadd.xlane.f32.xlu1 %v1096_v25  ;;  %v1099_v29 = vsel %vm331_vm0, %v1047_v21, 0.0 }
 0x1e8   : > { %v980_v30 = vmul.f32 0.2, %v882_v23  ;;  %1100 = vadd.xlane.f32.xlu0 %v1099_v29  ;;  %v1050_v38 = vmul.f32 %v2183_v15, %v1010_v22 }
 0x1e9   : > { %v979_v31 = vmul.f32 0.2, %v877_v28  ;;  %v1709_v32 = vpop.f32.mrb[12].mxu1  ;;  %v1049_v33 = vmul.f32 %v2183_v15, %v1009_v27 }
 0x1ea   : > { %v1012_v34 = vmax.f32 %v882_v23, %v980_v30  ;;  %v892_v35 = vadd.f32 %v1709_v32, %v2176_v8  ;;  %v886_v36 = vpop.f32.mrb[13].mxu1  ;;  %v1108_v49 = vsel %vm331_vm0, %v1050_v38, 0.0 }
 0x1eb   : > { %v1011_v39 = vmax.f32 %v877_v28, %v979_v31  ;;  %v887_v40 = vadd.f32 %v2176_v8, %v886_v36  ;;  %1103 = vadd.xlane.f32.xlu1 %v1102_v37  ;;  %v1105_v41 = vsel %vm331_vm0, %v1049_v33, 0.0 }
 0x1ec   : > { %v982_v42 = vmul.f32 0.2, %v892_v35  ;;  %1106 = vadd.xlane.f32.xlu0 %v1105_v41  ;;  %v1052_v50 = vmul.f32 %v2183_v15, %v1012_v34 }
 0x1ed   : > { %v981_v43 = vmul.f32 0.2, %v887_v40  ;;  %v1712_v44 = vpop.f32.mrb[14].mxu1  ;;  %v1051_v45 = vmul.f32 %v2183_v15, %v1011_v39 }
 0x1ee   : > { %v1014_v46 = vmax.f32 %v892_v35, %v982_v42  ;;  %v902_v47 = vadd.f32 %v1712_v44, %v2176_v8  ;;  %v896_v48 = vpop.f32.mrb[15].mxu1  ;;  %v1114_v61 = vsel %vm331_vm0, %v1052_v50, 0.0 }
 0x1ef   : > { %v1013_v51 = vmax.f32 %v887_v40, %v981_v43  ;;  %v897_v52 = vadd.f32 %v2176_v8, %v896_v48  ;;  %1109 = vadd.xlane.f32.xlu1 %v1108_v49  ;;  %v1111_v53 = vsel %vm331_vm0, %v1051_v45, 0.0 }
 0x1f0   : > { %v984_v54 = vmul.f32 0.2, %v902_v47  ;;  %1112 = vadd.xlane.f32.xlu0 %v1111_v53  ;;  %v1054_v62 = vmul.f32 %v2183_v15, %v1014_v46 }
 0x1f1   : > { %v983_v55 = vmul.f32 0.2, %v897_v52  ;;  %v1715_v56 = vpop.f32.mrb[16].mxu1  ;;  %v1053_v57 = vmul.f32 %v2183_v15, %v1013_v51 }
 0x1f2   : > { %v1016_v58 = vmax.f32 %v902_v47, %v984_v54  ;;  %v912_v59 = vadd.f32 %v1715_v56, %v2176_v8  ;;  %v906_v60 = vpop.f32.mrb[17].mxu1  ;;  %v1120_v11 = vsel %vm331_vm0, %v1054_v62, 0.0 }
 0x1f3   : > { %v1015_v63 = vmax.f32 %v897_v52, %v983_v55  ;;  %v907_v0 = vadd.f32 %v2176_v8, %v906_v60  ;;  %1115 = vadd.xlane.f32.xlu1 %v1114_v61  ;;  %v1117_v1 = vsel %vm331_vm0, %v1053_v57, 0.0 }
 0x1f4   : > { %v986_v2 = vmul.f32 0.2, %v912_v59  ;;  %1118 = vadd.xlane.f32.xlu0 %v1117_v1  ;;  %v1056_v12 = vmul.f32 %v2183_v15, %v1016_v58 }
 0x1f5   : > { %v985_v3 = vmul.f32 0.2, %v907_v0  ;;  %v1718_v4 = vpop.f32.mrb[18].mxu1  ;;  %v1055_v6 = vmul.f32 %v2183_v15, %v1015_v63 }
 0x1f6   : > { %v1018_v7 = vmax.f32 %v912_v59, %v986_v2  ;;  %v922_v9 = vadd.f32 %v1718_v4, %v2176_v8  ;;  %v916_v10 = vpop.f32.mrb[19].mxu1  ;;  %v1126_v23 = vsel %vm331_vm0, %v1056_v12, 0.0 }
 0x1f7   : > { %v1017_v5 = vmax.f32 %v907_v0, %v985_v3  ;;  %v917_v13 = vadd.f32 %v2176_v8, %v916_v10  ;;  %1121 = vadd.xlane.f32.xlu1 %v1120_v11  ;;  %v1123_v14 = vsel %vm331_vm0, %v1055_v6, 0.0 }
 0x1f8   : > { %v988_v16 = vmul.f32 0.2, %v922_v9  ;;  %1124 = vadd.xlane.f32.xlu0 %v1123_v14  ;;  %v1058_v24 = vmul.f32 %v2183_v15, %v1018_v7 }
 0x1f9   : > { %v987_v17 = vmul.f32 0.2, %v917_v13  ;;  %v1721_v18 = vpop.f32.mrb[20].mxu1  ;;  %v1057_v19 = vmul.f32 %v2183_v15, %v1017_v5 }
 0x1fa   : > { %v1020_v20 = vmax.f32 %v922_v9, %v988_v16  ;;  %v932_v21 = vadd.f32 %v1721_v18, %v2176_v8  ;;  %v926_v22 = vpop.f32.mrb[21].mxu1  ;;  %v1132_v35 = vsel %vm331_vm0, %v1058_v24, 0.0 }
 0x1fb   : > { %v1019_v25 = vmax.f32 %v917_v13, %v987_v17  ;;  %v927_v26 = vadd.f32 %v2176_v8, %v926_v22  ;;  %1127 = vadd.xlane.f32.xlu1 %v1126_v23  ;;  %v1129_v27 = vsel %vm331_vm0, %v1057_v19, 0.0  ;;  %v2279_v13 = vld [vmem:[#allocation2] ss:$0 sm:$0xff] }
 0x1fc   : > { %v990_v28 = vmul.f32 0.2, %v932_v21  ;;  %1130 = vadd.xlane.f32.xlu0 %v1129_v27  ;;  %v1060_v36 = vmul.f32 %v2183_v15, %v1020_v20 }
 0x1fd   : > { %v989_v29 = vmul.f32 0.2, %v927_v26  ;;  %v1724_v30 = vpop.f32.mrb[22].mxu1  ;;  %v1059_v31 = vmul.f32 %v2183_v15, %v1019_v25 }
 0x1fe   : > { %v1022_v32 = vmax.f32 %v932_v21, %v990_v28  ;;  %v942_v33 = vadd.f32 %v1724_v30, %v2176_v8  ;;  %v936_v34 = vpop.f32.mrb[23].mxu1  ;;  %v1138_v47 = vsel %vm331_vm0, %v1060_v36, 0.0 }
 0x1ff   : > { %v1021_v37 = vmax.f32 %v927_v26, %v989_v29  ;;  %v937_v38 = vadd.f32 %v2176_v8, %v936_v34  ;;  %1133 = vadd.xlane.f32.xlu1 %v1132_v35  ;;  %v1135_v39 = vsel %vm331_vm0, %v1059_v31, 0.0 }
 0x200   : > { %v992_v40 = vmul.f32 0.2, %v942_v33  ;;  %1136 = vadd.xlane.f32.xlu0 %v1135_v39  ;;  %v1062_v48 = vmul.f32 %v2183_v15, %v1022_v32 }
 0x201   : > { %v991_v41 = vmul.f32 0.2, %v937_v38  ;;  %v1727_v42 = vpop.f32.mrb[24].mxu1  ;;  %v1061_v43 = vmul.f32 %v2183_v15, %v1021_v37 }
 0x202   : > { %v1024_v44 = vmax.f32 %v942_v33, %v992_v40  ;;  %v952_v45 = vadd.f32 %v1727_v42, %v2176_v8  ;;  %v946_v46 = vpop.f32.mrb[25].mxu1  ;;  %v1144_v59 = vsel %vm331_vm0, %v1062_v48, 0.0 }
 0x203   : > { %v1023_v49 = vmax.f32 %v937_v38, %v991_v41  ;;  %v947_v50 = vadd.f32 %v2176_v8, %v946_v46  ;;  %1139 = vadd.xlane.f32.xlu1 %v1138_v47  ;;  %v1141_v51 = vsel %vm331_vm0, %v1061_v43, 0.0 }
 0x204   : > { %v994_v52 = vmul.f32 0.2, %v952_v45  ;;  %1142 = vadd.xlane.f32.xlu0 %v1141_v51  ;;  %v1064_v60 = vmul.f32 %v2183_v15, %v1024_v44 }
 0x205   : > { %v993_v53 = vmul.f32 0.2, %v947_v50  ;;  %v1730_v54 = vpop.f32.mrb[26].mxu1  ;;  %v1063_v55 = vmul.f32 %v2183_v15, %v1023_v49 }
 0x206   : > { %v1026_v56 = vmax.f32 %v952_v45, %v994_v52  ;;  %v962_v57 = vadd.f32 %v1730_v54, %v2176_v8  ;;  %v956_v58 = vpop.f32.mrb[27].mxu1  ;;  %v1150_v4 = vsel %vm331_vm0, %v1064_v60, 0.0 }
 0x207   : > { %v1025_v61 = vmax.f32 %v947_v50, %v993_v53  ;;  %v957_v62 = vadd.f32 %v2176_v8, %v956_v58  ;;  %1145 = vadd.xlane.f32.xlu1 %v1144_v59  ;;  %v1147_v63 = vsel %vm331_vm0, %v1063_v55, 0.0 }
 0x208   : > { %v996_v0 = vmul.f32 0.2, %v962_v57  ;;  %1148 = vadd.xlane.f32.xlu0 %v1147_v63  ;;  %v1066_v6 = vmul.f32 %v2183_v15, %v1026_v56 }
 0x209   : > { %v995_v1 = vmul.f32 0.2, %v957_v62  ;;  %v1065_v2 = vmul.f32 %v2183_v15, %v1025_v61 }
 0x20a   : > { %v1028_v3 = vmax.f32 %v962_v57, %v996_v0  ;;  %v1156_v11 = vsel %vm331_vm0, %v1066_v6, 0.0 }
 0x20b   : > { %v1027_v7 = vmax.f32 %v957_v62, %v995_v1  ;;  %1151 = vadd.xlane.f32.xlu1 %v1150_v4  ;;  %v1153_v9 = vsel %vm331_vm0, %v1065_v2, 0.0 }
 0x20c   : > { %1154 = vadd.xlane.f32.xlu0 %v1153_v9  ;;  %v1068_v8 = vmul.f32 %v2183_v15, %v1028_v3 }
 0x20d   : > { %v1067_v10 = vmul.f32 %v2183_v15, %v1027_v7 }
 0x20e   : > { %v1162_v5 = vsel %vm331_vm0, %v1068_v8, 0.0 }
 0x20f   : > { %1157 = vadd.xlane.f32.xlu1 %v1156_v11  ;;  %v1159_v12 = vsel %vm331_vm0, %v1067_v10, 0.0 }
 0x210   : > { %1160 = vadd.xlane.f32.xlu0 %v1159_v12 }
 0x213   : > { %1163 = vadd.xlane.f32.xlu1 %v1162_v5 }
 0x260   : > { %v1074_v14 = vpop.xlane.xlu0 %1073 }
 0x261   : > { %v1172_v16 = vadd.f32 %v2279_v13, %v1074_v14 }
 0x263   : > { %v1204_v17 = vsub.f32 0.0, %v1172_v16 }
 0x264   : > { %v1080_v18 = vpop.xlane.xlu1 %1079  ;;  %v1071_v19 = vpop.xlane.xlu0 %1070 }
 0x265   : > { %v1237_v20 = vmul.f32 1.442695, %v1204_v17  ;;  %v1174_v15 = vadd.f32 %v2279_v13, %v1080_v18  ;;  %v1171_v21 = vadd.f32 %v2279_v13, %v1071_v19 }
 0x267   : > { %1803 = vpow2.f32 %v1237_v20  ;;  %v1206_v22 = vsub.f32 0.0, %v1174_v15  ;;  %v1203_v23 = vsub.f32 0.0, %v1171_v21 }
 0x268   : > { %v1077_v24 = vpop.xlane.xlu1 %1076 }
 0x269   : > { %v1241_v25 = vmul.f32 1.442695, %v1206_v22  ;;  %v1235_v26 = vmul.f32 1.442695, %v1203_v23  ;;  %v1173_v27 = vadd.f32 %v2279_v13, %v1077_v24  ;;  %v1083_v28 = vpop.xlane.xlu0 %1082 }
 0x26a   : > { %v1175_v29 = vadd.f32 %v2279_v13, %v1083_v28 }
 0x26b   : > { %1805 = vpow2.f32 %v1241_v25  ;;  %v1205_v30 = vsub.f32 0.0, %v1173_v27 }
 0x26c   : > { %1807 = vpow2.f32 %v1235_v26  ;;  %v1207_v31 = vsub.f32 0.0, %v1175_v29  ;;  %v1086_v32 = vpop.xlane.xlu1 %1085 }
 0x26d   : > { %v1239_v33 = vmul.f32 1.442695, %v1205_v30  ;;  %v1176_v34 = vadd.f32 %v2279_v13, %v1086_v32  ;;  %v1089_v35 = vpop.xlane.xlu0 %1088 }
 0x26e   : > { %v1243_v36 = vmul.f32 1.442695, %v1207_v31  ;;  %v1177_v37 = vadd.f32 %v2279_v13, %v1089_v35 }
 0x26f   : > { %1809 = vpow2.f32 %v1239_v33  ;;  %v1208_v38 = vsub.f32 0.0, %v1176_v34 }
 0x270   : > { %1811 = vpow2.f32 %v1243_v36  ;;  %v1209_v39 = vsub.f32 0.0, %v1177_v37  ;;  %v1092_v40 = vpop.xlane.xlu1 %1091 }
 0x271   : > { %v1804_v41 = vpop.eup %1803  ;;  %v1245_v42 = vmul.f32 1.442695, %v1208_v38  ;;  %v1178_v43 = vadd.f32 %v2279_v13, %v1092_v40  ;;  %v1095_v44 = vpop.xlane.xlu0 %1094 }
 0x272   : > { %v1300_v45 = vadd.f32 1.0, %v1804_v41  ;;  %v1247_v46 = vmul.f32 1.442695, %v1209_v39  ;;  %v1179_v47 = vadd.f32 %v2279_v13, %v1095_v44 }
 0x273   : > { %1813 = vpow2.f32 %v1245_v42  ;;  %v1210_v48 = vsub.f32 0.0, %v1178_v43 }
 0x274   : > { %1815 = vrcp.f32 %v1300_v45  ;;  %v1211_v49 = vsub.f32 0.0, %v1179_v47  ;;  %v1098_v50 = vpop.xlane.xlu1 %1097 }
 0x275   : > { %v1806_v51 = vpop.eup %1805  ;;  %1817 = vpow2.f32 %v1247_v46  ;;  %v1249_v52 = vmul.f32 1.442695, %v1210_v48  ;;  %v1180_v53 = vadd.f32 %v2279_v13, %v1098_v50  ;;  %v1101_v54 = vpop.xlane.xlu0 %1100 }
 0x276   : > { %v1808_v55 = vpop.eup %1807  ;;  %v1302_v56 = vadd.f32 1.0, %v1806_v51  ;;  %v1251_v57 = vmul.f32 1.442695, %v1211_v49  ;;  %v1181_v58 = vadd.f32 %v2279_v13, %v1101_v54 }
 0x277   : > { %v1299_v59 = vadd.f32 1.0, %v1808_v55  ;;  %1819 = vpow2.f32 %v1249_v52  ;;  %v1212_v60 = vsub.f32 0.0, %v1180_v53 }
 0x278   : > { %1821 = vrcp.f32 %v1302_v56  ;;  %v1213_v61 = vsub.f32 0.0, %v1181_v58  ;;  %v1104_v62 = vpop.xlane.xlu1 %1103 }
 0x279   : > { %v1810_v63 = vpop.eup %1809  ;;  %1823 = vrcp.f32 %v1299_v59  ;;  %v1253_v0 = vmul.f32 1.442695, %v1212_v60  ;;  %v1182_v1 = vadd.f32 %v2279_v13, %v1104_v62  ;;  %v1107_v2 = vpop.xlane.xlu0 %1106 }
 0x27a   : > { %v1812_v3 = vpop.eup %1811  ;;  %v1301_v4 = vadd.f32 1.0, %v1810_v63  ;;  %1825 = vpow2.f32 %v1251_v57  ;;  %v1255_v6 = vmul.f32 1.442695, %v1213_v61  ;;  %v1183_v7 = vadd.f32 %v2279_v13, %v1107_v2 }
 0x27b   : > { %v1303_v9 = vadd.f32 1.0, %v1812_v3  ;;  %1827 = vpow2.f32 %v1253_v0  ;;  %v1214_v8 = vsub.f32 0.0, %v1182_v1 }
 0x27c   : > { %1829 = vrcp.f32 %v1301_v4  ;;  %v1215_v10 = vsub.f32 0.0, %v1183_v7  ;;  %v1110_v11 = vpop.xlane.xlu1 %1109 }
 0x27d   : > { %v1814_v12 = vpop.eup %1813  ;;  %1831 = vrcp.f32 %v1303_v9  ;;  %v1257_v5 = vmul.f32 1.442695, %v1214_v8  ;;  %v1184_v14 = vadd.f32 %v2279_v13, %v1110_v11  ;;  %v1113_v16 = vpop.xlane.xlu0 %1112 }
 0x27e   : > { %v1816_v17 = vpop.eup %1815  ;;  %v1304_v18 = vadd.f32 1.0, %v1814_v12  ;;  %1833 = vpow2.f32 %v1255_v6  ;;  %v1259_v19 = vmul.f32 1.442695, %v1215_v10  ;;  %v1185_v20 = vadd.f32 %v2279_v13, %v1113_v16 }
 0x27f   : > { %v1818_v15 = vpop.eup %1817  ;;  %1365 = vst.msk [vmem:[%s2299_s22 + $0x8] sm:$0xff] %vm1363_vm1, %v1816_v17  ;;  %1835 = vpow2.f32 %v1257_v5  ;;  %v1216_v21 = vsub.f32 0.0, %v1184_v14 }
 0x280   : > { %1837 = vrcp.f32 %v1304_v18  ;;  %v1305_v22 = vadd.f32 1.0, %v1818_v15  ;;  %v1217_v23 = vsub.f32 0.0, %v1185_v20  ;;  %v1116_v24 = vpop.xlane.xlu1 %1115 }
 0x281   : > { %v1820_v25 = vpop.eup %1819  ;;  %1839 = vpow2.f32 %v1259_v19  ;;  %v1261_v26 = vmul.f32 1.442695, %v1216_v21  ;;  %v1186_v27 = vadd.f32 %v2279_v13, %v1116_v24  ;;  %v1119_v28 = vpop.xlane.xlu0 %1118 }
 0x282   : > { %v1822_v29 = vpop.eup %1821  ;;  %1841 = vrcp.f32 %v1305_v22  ;;  %v1306_v30 = vadd.f32 1.0, %v1820_v25  ;;  %v1263_v31 = vmul.f32 1.442695, %v1217_v23  ;;  %v1187_v32 = vadd.f32 %v2279_v13, %v1119_v28 }
 0x283   : > { %v1824_v33 = vpop.eup %1823  ;;  %1367 = vst.msk [vmem:[%s2299_s22 + $0x18] sm:$0xff] %vm1363_vm1, %v1822_v29  ;;  %1843 = vpow2.f32 %v1261_v26  ;;  %v1218_v34 = vsub.f32 0.0, %v1186_v27 }
 0x284   : > { %v1826_v35 = vpop.eup %1825  ;;  %1364 = vst.msk [vmem:[%s2299_s22] sm:$0xff] %vm1363_vm1, %v1824_v33  ;;  %1845 = vrcp.f32 %v1306_v30  ;;  %v1219_v36 = vsub.f32 0.0, %v1187_v32  ;;  %v1122_v37 = vpop.xlane.xlu1 %1121 }
 0x285   : > { %v1828_v38 = vpop.eup %1827  ;;  %v1307_v39 = vadd.f32 1.0, %v1826_v35  ;;  %1847 = vpow2.f32 %v1263_v31  ;;  %v1265_v40 = vmul.f32 1.442695, %v1218_v34  ;;  %v1188_v41 = vadd.f32 %v2279_v13, %v1122_v37  ;;  %v1125_v42 = vpop.xlane.xlu0 %1124 }
 0x286   : > { %v1830_v43 = vpop.eup %1829  ;;  %v1308_v44 = vadd.f32 1.0, %v1828_v38  ;;  %v1267_v45 = vmul.f32 1.442695, %v1219_v36  ;;  %v1189_v46 = vadd.f32 %v2279_v13, %v1125_v42 }
 0x287   : > { %v1832_v47 = vpop.eup %1831  ;;  %1366 = vst.msk [vmem:[%s2299_s22 + $0x10] sm:$0xff] %vm1363_vm1, %v1830_v43  ;;  %1849 = vrcp.f32 %v1307_v39  ;;  %v1220_v48 = vsub.f32 0.0, %v1188_v41 }
 0x288   : > { %v1834_v49 = vpop.eup %1833  ;;  %1368 = vst.msk [vmem:[%s2299_s22 + $0x20] sm:$0xff] %vm1363_vm1, %v1832_v47  ;;  %1851 = vrcp.f32 %v1308_v44  ;;  %v1221_v50 = vsub.f32 0.0, %v1189_v46  ;;  %v1128_v51 = vpop.xlane.xlu1 %1127 }
 0x289   : > { %v1836_v52 = vpop.eup %1835  ;;  %v1309_v53 = vadd.f32 1.0, %v1834_v49  ;;  %1853 = vpow2.f32 %v1265_v40  ;;  %v1269_v54 = vmul.f32 1.442695, %v1220_v48  ;;  %v1190_v55 = vadd.f32 %v2279_v13, %v1128_v51  ;;  %v1131_v56 = vpop.xlane.xlu0 %1130 }
 0x28a   : > { %v1838_v57 = vpop.eup %1837  ;;  %v1310_v58 = vadd.f32 1.0, %v1836_v52  ;;  %1855 = vpow2.f32 %v1267_v45  ;;  %v1191_v59 = vadd.f32 %v2279_v13, %v1131_v56  ;;  %v1271_v61 = vmul.f32 1.442695, %v1221_v50 }
 0x28b   : > { %v1840_v60 = vpop.eup %1839  ;;  %1369 = vst.msk [vmem:[%s2299_s22 + $0x28] sm:$0xff] %vm1363_vm1, %v1838_v57  ;;  %1857 = vrcp.f32 %v1309_v53  ;;  %v1222_v62 = vsub.f32 0.0, %v1190_v55 }
 0x28c   : > { %v1842_v63 = vpop.eup %1841  ;;  %1859 = vrcp.f32 %v1310_v58  ;;  %v1311_v0 = vadd.f32 1.0, %v1840_v60  ;;  %v1223_v1 = vsub.f32 0.0, %v1191_v59  ;;  %v1134_v2 = vpop.xlane.xlu1 %1133 }
 0x28d   : > { %v1844_v3 = vpop.eup %1843  ;;  %1370 = vst.msk [vmem:[%s2299_s22 + $0x30] sm:$0xff] %vm1363_vm1, %v1842_v63  ;;  %1861 = vpow2.f32 %v1269_v54  ;;  %v1273_v4 = vmul.f32 1.442695, %v1222_v62  ;;  %v1192_v6 = vadd.f32 %v2279_v13, %v1134_v2  ;;  %v1137_v7 = vpop.xlane.xlu0 %1136 }
 0x28e   : > { %v1846_v9 = vpop.eup %1845  ;;  %1863 = vrcp.f32 %v1311_v0  ;;  %v1312_v8 = vadd.f32 1.0, %v1844_v3  ;;  %v1193_v10 = vadd.f32 %v2279_v13, %v1137_v7  ;;  %v1275_v12 = vmul.f32 1.442695, %v1223_v1 }
 0x28f   : > { %v1848_v11 = vpop.eup %1847  ;;  %1371 = vst.msk [vmem:[%s2299_s22 + $0x38] sm:$0xff] %vm1363_vm1, %v1846_v9  ;;  %1865 = vpow2.f32 %v1271_v61  ;;  %v1224_v5 = vsub.f32 0.0, %v1192_v6 }
 0x290   : > { %1867 = vrcp.f32 %v1312_v8  ;;  %v1313_v14 = vadd.f32 1.0, %v1848_v11  ;;  %v1225_v16 = vsub.f32 0.0, %v1193_v10  ;;  %v1140_v17 = vpop.xlane.xlu1 %1139 }
 0x291   : > { %v1850_v18 = vpop.eup %1849  ;;  %1869 = vpow2.f32 %v1273_v4  ;;  %v1277_v19 = vmul.f32 1.442695, %v1224_v5  ;;  %v1194_v20 = vadd.f32 %v2279_v13, %v1140_v17  ;;  %v1143_v15 = vpop.xlane.xlu0 %1142 }
 0x292   : > { %v1852_v21 = vpop.eup %1851  ;;  %1372 = vst.msk [vmem:[%s2299_s22 + $0x40] sm:$0xff] %vm1363_vm1, %v1850_v18  ;;  %1871 = vrcp.f32 %v1313_v14  ;;  %v1279_v22 = vmul.f32 1.442695, %v1225_v16  ;;  %v1195_v23 = vadd.f32 %v2279_v13, %v1143_v15 }
 0x293   : > { %v1854_v24 = vpop.eup %1853  ;;  %1373 = vst.msk [vmem:[%s2299_s22 + $0x48] sm:$0xff] %vm1363_vm1, %v1852_v21  ;;  %1873 = vpow2.f32 %v1275_v12  ;;  %v1226_v25 = vsub.f32 0.0, %v1194_v20 }
 0x294   : > { %v1856_v26 = vpop.eup %1855  ;;  %v1314_v27 = vadd.f32 1.0, %v1854_v24  ;;  %1875 = vpow2.f32 %v1277_v19  ;;  %v1227_v28 = vsub.f32 0.0, %v1195_v23  ;;  %v1146_v29 = vpop.xlane.xlu1 %1145 }
 0x295   : > { %v1858_v30 = vpop.eup %1857  ;;  %v1315_v31 = vadd.f32 1.0, %v1856_v26  ;;  %1877 = vpow2.f32 %v1279_v22  ;;  %v1281_v32 = vmul.f32 1.442695, %v1226_v25  ;;  %v1196_v33 = vadd.f32 %v2279_v13, %v1146_v29  ;;  %v1149_v34 = vpop.xlane.xlu0 %1148 }
 0x296   : > { %v1860_v35 = vpop.eup %1859  ;;  %1374 = vst.msk [vmem:[%s2299_s22 + $0x50] sm:$0xff] %vm1363_vm1, %v1858_v30  ;;  %1879 = vrcp.f32 %v1314_v27  ;;  %v1283_v36 = vmul.f32 1.442695, %v1227_v28  ;;  %v1197_v37 = vadd.f32 %v2279_v13, %v1149_v34 }
 0x297   : > { %v1862_v38 = vpop.eup %1861  ;;  %1375 = vst.msk [vmem:[%s2299_s22 + $0x58] sm:$0xff] %vm1363_vm1, %v1860_v35  ;;  %1881 = vrcp.f32 %v1315_v31  ;;  %v1228_v39 = vsub.f32 0.0, %v1196_v33 }
 0x298   : > { %v1864_v40 = vpop.eup %1863  ;;  %v1316_v41 = vadd.f32 1.0, %v1862_v38  ;;  %1883 = vpow2.f32 %v1281_v32  ;;  %v1229_v42 = vsub.f32 0.0, %v1197_v37  ;;  %v1152_v43 = vpop.xlane.xlu1 %1151 }
 0x299   : > { %v1866_v44 = vpop.eup %1865  ;;  %1376 = vst.msk [vmem:[%s2299_s22 + $0x60] sm:$0xff] %vm1363_vm1, %v1864_v40  ;;  %1885 = vpow2.f32 %v1283_v36  ;;  %v1285_v45 = vmul.f32 1.442695, %v1228_v39  ;;  %v1198_v46 = vadd.f32 %v2279_v13, %v1152_v43  ;;  %v1155_v47 = vpop.xlane.xlu0 %1154 }
 0x29a   : > { %v1868_v48 = vpop.eup %1867  ;;  %1887 = vrcp.f32 %v1316_v41  ;;  %v1317_v49 = vadd.f32 1.0, %v1866_v44  ;;  %v1287_v50 = vmul.f32 1.442695, %v1229_v42  ;;  %v1199_v51 = vadd.f32 %v2279_v13, %v1155_v47 }
 0x29b   : > { %v1870_v52 = vpop.eup %1869  ;;  %1377 = vst.msk [vmem:[%s2299_s22 + $0x68] sm:$0xff] %vm1363_vm1, %v1868_v48  ;;  %1889 = vpow2.f32 %v1285_v45  ;;  %v1230_v53 = vsub.f32 0.0, %v1198_v46 }
 0x29c   : > { %v1872_v54 = vpop.eup %1871  ;;  %1891 = vrcp.f32 %v1317_v49  ;;  %v1318_v55 = vadd.f32 1.0, %v1870_v52  ;;  %v1231_v56 = vsub.f32 0.0, %v1199_v51  ;;  %v1158_v57 = vpop.xlane.xlu1 %1157 }
 0x29d   : > { %v1874_v58 = vpop.eup %1873  ;;  %1378 = vst.msk [vmem:[%s2299_s22 + $0x70] sm:$0xff] %vm1363_vm1, %v1872_v54  ;;  %1893 = vpow2.f32 %v1287_v50  ;;  %v1289_v59 = vmul.f32 1.442695, %v1230_v53  ;;  %v1200_v60 = vadd.f32 %v2279_v13, %v1158_v57  ;;  %v1161_v61 = vpop.xlane.xlu0 %1160 }
 0x29e   : > { %v1876_v62 = vpop.eup %1875  ;;  %1895 = vrcp.f32 %v1318_v55  ;;  %v1319_v63 = vadd.f32 1.0, %v1874_v58  ;;  %v1201_v0 = vadd.f32 %v2279_v13, %v1161_v61  ;;  %v1291_v3 = vmul.f32 1.442695, %v1231_v56 }
 0x29f   : > { %v1878_v1 = vpop.eup %1877  ;;  %v1320_v2 = vadd.f32 1.0, %v1876_v62  ;;  %1897 = vpow2.f32 %v1289_v59  ;;  %v1232_v4 = vsub.f32 0.0, %v1200_v60 }
 0x2a0   : > { %v1880_v6 = vpop.eup %1879  ;;  %1899 = vrcp.f32 %v1319_v63  ;;  %v1321_v7 = vadd.f32 1.0, %v1878_v1  ;;  %v1233_v9 = vsub.f32 0.0, %v1201_v0  ;;  %v1164_v8 = vpop.xlane.xlu1 %1163 }
 0x2a1   : > { %v1882_v10 = vpop.eup %1881  ;;  %1379 = vst.msk [vmem:[%s2299_s22 + $0x78] sm:$0xff] %vm1363_vm1, %v1880_v6  ;;  %1901 = vrcp.f32 %v1320_v2  ;;  %v1293_v11 = vmul.f32 1.442695, %v1232_v4  ;;  %v1202_v12 = vadd.f32 %v2279_v13, %v1164_v8 }
 0x2a2   : > { %v1884_v5 = vpop.eup %1883  ;;  %1380 = vst.msk [vmem:[%s2299_s22 + $0x80] sm:$0xff] %vm1363_vm1, %v1882_v10  ;;  %1903 = vrcp.f32 %v1321_v7  ;;  %v1295_v17 = vmul.f32 1.442695, %v1233_v9 }
 0x2a3   : > { %v1886_v14 = vpop.eup %1885  ;;  %v1322_v16 = vadd.f32 1.0, %v1884_v5  ;;  %1905 = vpow2.f32 %v1291_v3  ;;  %v1234_v18 = vsub.f32 0.0, %v1202_v12 }
 0x2a4   : > { %v1888_v19 = vpop.eup %1887  ;;  %v1323_v20 = vadd.f32 1.0, %v1886_v14  ;;  %1907 = vpow2.f32 %v1293_v11 }
 0x2a5   : > { %v1890_v15 = vpop.eup %1889  ;;  %1381 = vst.msk [vmem:[%s2299_s22 + $0x88] sm:$0xff] %vm1363_vm1, %v1888_v19  ;;  %1909 = vrcp.f32 %v1322_v16  ;;  %v1297_v21 = vmul.f32 1.442695, %v1234_v18 }
 0x2a6   : > { %v1892_v13 = vpop.eup %1891  ;;  %1911 = vrcp.f32 %v1323_v20  ;;  %v1324_v22 = vadd.f32 1.0, %v1890_v15 }
 0x2a7   : > { %v1894_v23 = vpop.eup %1893  ;;  %1382 = vst.msk [vmem:[%s2299_s22 + $0x90] sm:$0xff] %vm1363_vm1, %v1892_v13  ;;  %1913 = vpow2.f32 %v1295_v17 }
 0x2a8   : > { %v1896_v24 = vpop.eup %1895  ;;  %1915 = vrcp.f32 %v1324_v22  ;;  %v1325_v25 = vadd.f32 1.0, %v1894_v23 }
 0x2a9   : > { %v1898_v26 = vpop.eup %1897  ;;  %1383 = vst.msk [vmem:[%s2299_s22 + $0x98] sm:$0xff] %vm1363_vm1, %v1896_v24  ;;  %1917 = vpow2.f32 %v1297_v21 }
 0x2aa   : > { %v1900_v27 = vpop.eup %1899  ;;  %1919 = vrcp.f32 %v1325_v25  ;;  %v1326_v28 = vadd.f32 1.0, %v1898_v26 }
 0x2ab   : > { %v1902_v29 = vpop.eup %1901  ;;  %1384 = vst.msk [vmem:[%s2299_s22 + $0xa0] sm:$0xff] %vm1363_vm1, %v1900_v27 }
 0x2ac   : > { %v1904_v30 = vpop.eup %1903  ;;  %1385 = vst.msk [vmem:[%s2299_s22 + $0xa8] sm:$0xff] %vm1363_vm1, %v1902_v29  ;;  %1921 = vrcp.f32 %v1326_v28 }
 0x2ad   : > { %v1906_v31 = vpop.eup %1905  ;;  %1386 = vst.msk [vmem:[%s2299_s22 + $0xb0] sm:$0xff] %vm1363_vm1, %v1904_v30 }
 0x2ae   : > { %v1908_v32 = vpop.eup %1907  ;;  %v1327_v33 = vadd.f32 1.0, %v1906_v31 }
 0x2af   : > { %v1910_v34 = vpop.eup %1909  ;;  %v1328_v35 = vadd.f32 1.0, %v1908_v32 }
 0x2b0   : > { %v1912_v36 = vpop.eup %1911  ;;  %1387 = vst.msk [vmem:[%s2299_s22 + $0xb8] sm:$0xff] %vm1363_vm1, %v1910_v34  ;;  %1923 = vrcp.f32 %v1327_v33 }
 0x2b1   : > { %v1914_v37 = vpop.eup %1913  ;;  %1388 = vst.msk [vmem:[%s2299_s22 + $0xc0] sm:$0xff] %vm1363_vm1, %v1912_v36  ;;  %1925 = vrcp.f32 %v1328_v35 }
 0x2b2   : > { %v1916_v38 = vpop.eup %1915  ;;  %v1329_v39 = vadd.f32 1.0, %v1914_v37 }
 0x2b3   : > { %v1918_v40 = vpop.eup %1917  ;;  %1389 = vst.msk [vmem:[%s2299_s22 + $0xc8] sm:$0xff] %vm1363_vm1, %v1916_v38 }
 0x2b4   : > { %v1920_v41 = vpop.eup %1919  ;;  %1927 = vrcp.f32 %v1329_v39  ;;  %v1330_v42 = vadd.f32 1.0, %v1918_v40 }
 0x2b5   : > { %1390 = vst.msk [vmem:[%s2299_s22 + $0xd0] sm:$0xff] %vm1363_vm1, %v1920_v41 }
 0x2b6   : > { %v1922_v43 = vpop.eup %1921  ;;  %1929 = vrcp.f32 %v1330_v42 }
 0x2b7   : > { %1391 = vst.msk [vmem:[%s2299_s22 + $0xd8] sm:$0xff] %vm1363_vm1, %v1922_v43 }
 0x2ba   : > { %v1924_v44 = vpop.eup %1923 }
 0x2bb   : > { %v1926_v45 = vpop.eup %1925  ;;  %1392 = vst.msk [vmem:[%s2299_s22 + $0xe0] sm:$0xff] %vm1363_vm1, %v1924_v44 }
 0x2bc   : > { %1393 = vst.msk [vmem:[%s2299_s22 + $0xe8] sm:$0xff] %vm1363_vm1, %v1926_v45 }
 0x2be   : > { %v1928_v46 = vpop.eup %1927 }
 0x2bf   : > { %1394 = vst.msk [vmem:[%s2299_s22 + $0xf0] sm:$0xff] %vm1363_vm1, %v1928_v46 }
 0x2c0   : > { %v1930_v47 = vpop.eup %1929 }
 0x2c1   : > { %1395 = vst.msk [vmem:[%s2299_s22 + $0xf8] sm:$0xff] %vm1363_vm1, %v1930_v47 }
 0x2c2 PF: > { %s19_s26 = sadd.s32 1, %s1937_s26  }
 0x2c3   : > { %p16_p4 = scmp.ge.s32.totalorder %s19_s26, 4  }
 0x2c5   :  { %18 = sbr.rel (!%p16_p4) target bundleno = 3 (0x3), region = 78 }

</bundles_post_ra>
